<compile_context>
chip_gen: v7x
topology: tpu7x:2x2x1
jax: 0.10.0
libtpu: 0.0.40
codegen_flags: <defaults>
</compile_context>

<pallas_src>
import functools

import jax
import jax.numpy as jnp
from jax import lax
from jax.experimental import pallas as pl
from jax.experimental.pallas import tpu as pltpu


def _conv2d_kernel(x_ref, w_ref, b_ref, o_ref, patch_ref, *, W, KH, KW, pair_taps):
    """One grid step: B images -> one [Cout, K] x [K, B*HoWp] GEMM on the MXU.

    x_ref:     (B, Cin, H*W)        raw NCHW images, rows flattened (no padding)
    w_ref:     (Cout, Cin*KH*KW)    weights, K ordered (kh, kw, ci)
    b_ref:     (Cout, 1)            bias (f32)
    o_ref:     (B, Cout, HoWp)      wide output; per output row, cols >= Wo are
                                    wrap-around scrap, cols >= Ho*W are pad scrap
    patch_ref: (Cin*KH*KW, B*HoWp)  VMEM im2col scratch

    Shortened-slice correctness: an output element (i, j) that survives the wrapper
    crop (i < Ho, j < Wo) reads, for tap (kh, kw) at flat offset off = kh*W + kw,
    patch column p = i*W + j whose source index off + p = (i+kh)*W + (j+kw)
    <= (H-1)*W + (W-1) < H*W.  So every *consumed* patch column lies inside the
    in-bounds slice of width min(HoWp, H*W - off); the uncovered columns hold stale
    VMEM data and only feed cropped scrap outputs.  For a paired store of taps
    (t, t+1) at the smaller width w_{t+1}, the same bound applied with off_{t+1}
    shows the consumed columns of tap t also satisfy p < w_{t+1}.
    """
    B, Cin, HW = x_ref.shape
    HoWp = o_ref.shape[2]
    n_taps = KH * KW
    offs = [kh * W + kw for kh in range(KH) for kw in range(KW)]
    widths = [min(HoWp, HW - off) for off in offs]

    # Gather the conv taps (im2col).  Pair consecutive taps into one 2*Cin-sublane
    # store when Cin is not already a multiple of 8 (fewer / unmasked vst).
    for b in range(B):
        col0 = b * HoWp
        t = 0
        while t < n_taps:
            if pair_taps and t + 1 < n_taps:
                wp = widths[t + 1]                       # smaller of the pair
                pair = jnp.concatenate(
                    [x_ref[b, :, offs[t]:offs[t] + wp],
                     x_ref[b, :, offs[t + 1]:offs[t + 1] + wp]], axis=0)
                patch_ref[t * Cin:(t + 2) * Cin, col0:col0 + wp] = pair
                t += 2
            else:
                wt = widths[t]
                patch_ref[t * Cin:(t + 1) * Cin, col0:col0 + wt] = (
                    x_ref[b, :, offs[t]:offs[t] + wt])
                t += 1

    # One GEMM on the MXU: [Cout, K] x [K, B*HoWp] -> [Cout, B*HoWp], f32 accumulation.
    acc = jnp.dot(w_ref[...], patch_ref[...], preferred_element_type=jnp.float32)
    acc = acc + b_ref[...].astype(jnp.float32)           # (Cout, 1) lane-broadcast
    for b in range(B):                                   # lane-aligned HoWp-wide splits
        o_ref[b] = acc[:, b * HoWp:(b + 1) * HoWp].astype(o_ref.dtype)


def _pick_batch_block(N, Cin, HW, Cout, K, HoWp, itemsize, budget_bytes=24 << 20):
    """Largest batch block B that (a) divides N, (b) keeps >= 2 grid steps when
    N >= 2 (so both v7x TensorCores get work), and (c) fits the VMEM budget."""
    best = 1
    for B in range(1, N + 1):
        if N % B:
            continue
        if N >= 2 and N // B < 2:
            continue
        est = itemsize * (2 * B * Cin * HW           # double-buffered input block
                          + 2 * Cout * K             # weights (resident)
                          + 2 * B * Cout * HoWp      # double-buffered output block
                          + K * B * HoWp)            # im2col scratch
        if est <= budget_bytes:
            best = B
    return best


def conv2d_pallas(x_nchw, weight, bias, *, batch_block=None):
    """x_nchw: (N, Cin, H, W); weight: (Cout, Cin, KH, KW); bias: (Cout,).

    Matches torch.nn.Conv2d(Cin, Cout, (KH, KW)) with stride=1, padding=0.
    Returns (N, Cout, Ho, Wo).
    """
    N, Cin, H, W = x_nchw.shape
    Cout, Cin_w, KH, KW = weight.shape
    assert Cin_w == Cin
    Ho, Wo = H - KH + 1, W - KW + 1
    HW = H * W
    HoW = Ho * W                                      # wide (uncropped) row length
    HoWp = ((HoW + 127) // 128) * 128                 # lane-dense: multiple of 128
    K = Cin * KH * KW
    itemsize = jnp.dtype(x_nchw.dtype).itemsize

    # Free reshape only: no pad copy, no transpose (input stays NCHW).
    x_flat = x_nchw.reshape(N, Cin, HW)
    # Weight as [Cout, K] with K ordered (kh, kw, ci) to match the im2col row order.
    # Operands stay in the activation dtype (bf16 activations -> full-rate MXU);
    # accumulation is always f32.
    w2d = jnp.transpose(weight, (0, 2, 3, 1)).reshape(Cout, K).astype(x_nchw.dtype)
    b2d = bias.reshape(Cout, 1).astype(jnp.float32)

    if batch_block is None:
        batch_block = _pick_batch_block(N, Cin, HW, Cout, K, HoWp, itemsize)
    B = batch_block
    assert N % B == 0, "batch_block must divide N"
    nblk = N // B
    # TODO(synk): when N == 1 on v7x, add a second 'parallel' grid axis over Ho blocks
    # so the second TensorCore is not idle.

    est_vmem = itemsize * (2 * B * Cin * HW + 2 * Cout * K + 2 * B * Cout * HoWp
                           + K * B * HoWp) + 8 * Cout * 4
    vmem_limit = int(min(64 << 20, max(16 << 20, 2 * est_vmem)))

    cost = pl.CostEstimate(
        flops=2 * N * Cout * K * HoWp,
        transcendentals=0,
        bytes_accessed=int(itemsize * (x_flat.size + nblk * w2d.size
                                       + N * Cout * HoWp) + 4 * nblk * Cout),
    )

    pair_taps = (Cin % 8 != 0) and (KH * KW >= 2)

    out_wide = pl.pallas_call(
        functools.partial(_conv2d_kernel, W=W, KH=KH, KW=KW, pair_taps=pair_taps),
        out_shape=jax.ShapeDtypeStruct((N, Cout, HoWp), x_nchw.dtype),
        grid_spec=pltpu.PrefetchScalarGridSpec(
            num_scalar_prefetch=0,
            grid=(nblk,),
            in_specs=[
                pl.BlockSpec((B, Cin, HW), lambda n: (n, 0, 0)),
                pl.BlockSpec((Cout, K), lambda n: (0, 0)),
                pl.BlockSpec((Cout, 1), lambda n: (0, 0)),
            ],
            out_specs=pl.BlockSpec((B, Cout, HoWp), lambda n: (n, 0, 0)),
            scratch_shapes=[pltpu.VMEM((K, B * HoWp), x_nchw.dtype)],
        ),
        compiler_params=pltpu.CompilerParams(
            dimension_semantics=("parallel",),
            vmem_limit_bytes=vmem_limit,
        ),
        cost_estimate=cost,
    )(x_flat, w2d, b2d)

    # Single fused crop: drop the HoWp pad tail and the (KW-1) wrap-around columns of
    # each output row.  NOTE: consumers that can read the wide (N, Cout, Ho, W) layout
    # should take the uncropped output directly and fold this crop into their own read.
    return out_wide[:, :, :HoW].reshape(N, Cout, Ho, W)[:, :, :, :Wo]


if __name__ == "__main__":
    # Module config: Conv2D(output_channels=8, kernel_shape=3); input NCHW (2, 4, 16, 16)
    N, Cin, H, W = 2, 4, 16, 16
    Cout, KH, KW = 8, 3, 3

    key = jax.random.PRNGKey(0)
    kx, kw, kb = jax.random.split(key, 3)

    x = jax.random.normal(kx, (N, Cin, H, W), dtype=jnp.float32)
    # Deterministic parameter init (PyTorch nn.Conv2d shapes: weight (Cout,Cin,KH,KW), bias (Cout,))
    fan_in = Cin * KH * KW
    bound = 1.0 / (fan_in ** 0.5)
    weight = jax.random.uniform(kw, (Cout, Cin, KH, KW), jnp.float32, -bound, bound)
    bias = jax.random.uniform(kb, (Cout,), jnp.float32, -bound, bound)

    out = conv2d_pallas(x, weight, bias)
    out = jax.block_until_ready(out)

    # Sanity check against XLA's conv (same semantics as nn.Conv2d valid conv).
    ref = lax.conv_general_dilated(
        x, weight, window_strides=(1, 1), padding="VALID",
        dimension_numbers=("NCHW", "OIHW", "NCHW"),
    ) + bias.reshape(1, Cout, 1, 1)
    assert out.shape == (N, Cout, H - KH + 1, W - KW + 1)
    assert jnp.allclose(out, ref, atol=1e-4, rtol=1e-4)

    print("KERNEL_OK")
</pallas_src>

<mosaic_0001>
module attributes {stable_mosaic.version = 11 : i64} {
  func.func @_conv2d_kernel(%arg0: i32, %arg1: memref<1x4x256xf32, #tpu.memory_space<vmem>>, %arg2: memref<8x36xf32, #tpu.memory_space<vmem>>, %arg3: memref<8x1xf32, #tpu.memory_space<vmem>>, %arg4: memref<1x8x256xf32, #tpu.memory_space<vmem>>, %arg5: memref<36x256xf32, #tpu.memory_space<vmem>>) attributes {dimension_semantics = [#tpu.dimension_semantics<parallel>], iteration_bounds = array<i64: 2>, scalar_prefetch = 0 : i64, scratch_operands = 1 : i64, tpu.core_type = #tpu.core_type<tc>, window_params = [{transform_indices = @transform_0, window_bounds = array<i64: 1, 4, 256>}, {pipeline_mode = #tpu.pipeline_mode<synchronous>, transform_indices = @transform_1, window_bounds = array<i64: 8, 36>}, {pipeline_mode = #tpu.pipeline_mode<synchronous>, transform_indices = @transform_2, window_bounds = array<i64: 8, 1>}, {transform_indices = @transform_3, window_bounds = array<i64: 1, 8, 256>}]} {
    %c0 = arith.constant 0 : index
    %c0_0 = arith.constant 0 : index
    %c0_1 = arith.constant 0 : index
    %0 = vector.load %arg1[%c0, %c0_0, %c0_1] : memref<1x4x256xf32, #tpu.memory_space<vmem>>, vector<1x4x255xf32>
    %1 = vector.shape_cast %0 : vector<1x4x255xf32> to vector<4x255xf32>
    %c0_2 = arith.constant 0 : index
    %c0_3 = arith.constant 0 : index
    %c1 = arith.constant 1 : index
    %2 = vector.load %arg1[%c0_2, %c0_3, %c1] : memref<1x4x256xf32, #tpu.memory_space<vmem>>, vector<1x4x255xf32>
    %3 = vector.shape_cast %2 : vector<1x4x255xf32> to vector<4x255xf32>
    %4 = tpu.concatenate %1, %3 in 0 : vector<4x255xf32>, vector<4x255xf32> -> vector<8x255xf32>
    %c0_4 = arith.constant 0 : index
    %c0_5 = arith.constant 0 : index
    %5 = vector.load %arg5[%c0_4, %c0_5] : memref<36x256xf32, #tpu.memory_space<vmem>>, vector<8x255xf32>
    tpu.vector_store %arg5[%c0_4, %c0_5], %4 {strides = array<i32>} : memref<36x256xf32, #tpu.memory_space<vmem>>, vector<8x255xf32>,
    %c0_6 = arith.constant 0 : index
    %c0_7 = arith.constant 0 : index
    %c2 = arith.constant 2 : index
    %6 = vector.load %arg1[%c0_6, %c0_7, %c2] : memref<1x4x256xf32, #tpu.memory_space<vmem>>, vector<1x4x240xf32>
    %7 = vector.shape_cast %6 : vector<1x4x240xf32> to vector<4x240xf32>
    %c0_8 = arith.constant 0 : index
    %c0_9 = arith.constant 0 : index
    %c16 = arith.constant 16 : index
    %8 = vector.load %arg1[%c0_8, %c0_9, %c16] : memref<1x4x256xf32, #tpu.memory_space<vmem>>, vector<1x4x240xf32>
    %9 = vector.shape_cast %8 : vector<1x4x240xf32> to vector<4x240xf32>
    %10 = tpu.concatenate %7, %9 in 0 : vector<4x240xf32>, vector<4x240xf32> -> vector<8x240xf32>
    %c8 = arith.constant 8 : index
    %c0_10 = arith.constant 0 : index
    %11 = vector.load %arg5[%c8, %c0_10] : memref<36x256xf32, #tpu.memory_space<vmem>>, vector<8x240xf32>
    tpu.vector_store %arg5[%c8, %c0_10], %10 {strides = array<i32>} : memref<36x256xf32, #tpu.memory_space<vmem>>, vector<8x240xf32>,
    %c0_11 = arith.constant 0 : index
    %c0_12 = arith.constant 0 : index
    %c17 = arith.constant 17 : index
    %12 = vector.load %arg1[%c0_11, %c0_12, %c17] : memref<1x4x256xf32, #tpu.memory_space<vmem>>, vector<1x4x238xf32>
    %13 = vector.shape_cast %12 : vector<1x4x238xf32> to vector<4x238xf32>
    %c0_13 = arith.constant 0 : index
    %c0_14 = arith.constant 0 : index
    %c18 = arith.constant 18 : index
    %14 = vector.load %arg1[%c0_13, %c0_14, %c18] : memref<1x4x256xf32, #tpu.memory_space<vmem>>, vector<1x4x238xf32>
    %15 = vector.shape_cast %14 : vector<1x4x238xf32> to vector<4x238xf32>
    %16 = tpu.concatenate %13, %15 in 0 : vector<4x238xf32>, vector<4x238xf32> -> vector<8x238xf32>
    %c16_15 = arith.constant 16 : index
    %c0_16 = arith.constant 0 : index
    %17 = vector.load %arg5[%c16_15, %c0_16] : memref<36x256xf32, #tpu.memory_space<vmem>>, vector<8x238xf32>
    tpu.vector_store %arg5[%c16_15, %c0_16], %16 {strides = array<i32>} : memref<36x256xf32, #tpu.memory_space<vmem>>, vector<8x238xf32>,
    %c0_17 = arith.constant 0 : index
    %c0_18 = arith.constant 0 : index
    %c32 = arith.constant 32 : index
    %18 = vector.load %arg1[%c0_17, %c0_18, %c32] : memref<1x4x256xf32, #tpu.memory_space<vmem>>, vector<1x4x223xf32>
    %19 = vector.shape_cast %18 : vector<1x4x223xf32> to vector<4x223xf32>
    %c0_19 = arith.constant 0 : index
    %c0_20 = arith.constant 0 : index
    %c33 = arith.constant 33 : index
    %20 = vector.load %arg1[%c0_19, %c0_20, %c33] : memref<1x4x256xf32, #tpu.memory_space<vmem>>, vector<1x4x223xf32>
    %21 = vector.shape_cast %20 : vector<1x4x223xf32> to vector<4x223xf32>
    %22 = tpu.concatenate %19, %21 in 0 : vector<4x223xf32>, vector<4x223xf32> -> vector<8x223xf32>
    %c24 = arith.constant 24 : index
    %c0_21 = arith.constant 0 : index
    %23 = vector.load %arg5[%c24, %c0_21] : memref<36x256xf32, #tpu.memory_space<vmem>>, vector<8x223xf32>
    tpu.vector_store %arg5[%c24, %c0_21], %22 {strides = array<i32>} : memref<36x256xf32, #tpu.memory_space<vmem>>, vector<8x223xf32>,
    %c0_22 = arith.constant 0 : index
    %c0_23 = arith.constant 0 : index
    %c34 = arith.constant 34 : index
    %24 = vector.load %arg1[%c0_22, %c0_23, %c34] : memref<1x4x256xf32, #tpu.memory_space<vmem>>, vector<1x4x222xf32>
    %25 = vector.shape_cast %24 : vector<1x4x222xf32> to vector<4x222xf32>
    %c32_24 = arith.constant 32 : index
    %c0_25 = arith.constant 0 : index
    %26 = vector.load %arg5[%c32_24, %c0_25] : memref<36x256xf32, #tpu.memory_space<vmem>>, vector<4x222xf32>
    tpu.vector_store %arg5[%c32_24, %c0_25], %25 {strides = array<i32>} : memref<36x256xf32, #tpu.memory_space<vmem>>, vector<4x222xf32>,
    %c0_26 = arith.constant 0 : index
    %c0_27 = arith.constant 0 : index
    %27 = vector.load %arg2[%c0_26, %c0_27] : memref<8x36xf32, #tpu.memory_space<vmem>>, vector<8x36xf32>
    %c0_28 = arith.constant 0 : index
    %c0_29 = arith.constant 0 : index
    %28 = vector.load %arg5[%c0_28, %c0_29] : memref<36x256xf32, #tpu.memory_space<vmem>>, vector<36x256xf32>
    %cst = arith.constant dense<0.000000e+00> : vector<8x256xf32>
    %29 = tpu.matmul %27, %28, %cst {dimension_numbers = #tpu.dot_dimension_numbers<[1], [0], [0], [1], [0, 0, 1, 1], [], []>} : vector<8x36xf32>, vector<36x256xf32>, vector<8x256xf32> -> vector<8x256xf32>
    %c0_30 = arith.constant 0 : index
    %c0_31 = arith.constant 0 : index
    %30 = vector.load %arg3[%c0_30, %c0_31] : memref<8x1xf32, #tpu.memory_space<vmem>>, vector<8x1xf32>
    %31 = vector.broadcast %30 : vector<8x1xf32> to vector<8x256xf32>
    %32 = arith.addf %29, %31 : vector<8x256xf32>
    %c0_32 = arith.constant 0 : index
    %c0_33 = arith.constant 0 : index
    %c0_34 = arith.constant 0 : index
    %33 = vector.load %arg4[%c0_32, %c0_33, %c0_34] : memref<1x8x256xf32, #tpu.memory_space<vmem>>, vector<1x8x256xf32>
    %34 = vector.shape_cast %33 : vector<1x8x256xf32> to vector<8x256xf32>
    %35 = vector.shape_cast %32 : vector<8x256xf32> to vector<1x8x256xf32>
    tpu.vector_store %arg4[%c0_32, %c0_33, %c0_34], %35 {strides = array<i32>} : memref<1x8x256xf32, #tpu.memory_space<vmem>>, vector<1x8x256xf32>,
    return
  }
  func.func @transform_0(%arg0: i32) -> (i32, i32, i32) {
    %c0_i32 = arith.constant 0 : i32
    %c0_i32_0 = arith.constant 0 : i32
    %c0_i32_1 = arith.constant 0 : i32
    return %arg0, %c0_i32, %c0_i32_0 : i32, i32, i32
  }
  func.func @transform_1(%arg0: i32) -> (i32, i32) {
    %c0_i32 = arith.constant 0 : i32
    %c0_i32_0 = arith.constant 0 : i32
    %c0_i32_1 = arith.constant 0 : i32
    return %c0_i32, %c0_i32_0 : i32, i32
  }
  func.func @transform_2(%arg0: i32) -> (i32, i32) {
    %c0_i32 = arith.constant 0 : i32
    %c0_i32_0 = arith.constant 0 : i32
    %c0_i32_1 = arith.constant 0 : i32
    return %c0_i32, %c0_i32_0 : i32, i32
  }
  func.func @transform_3(%arg0: i32) -> (i32, i32, i32) {
    %c0_i32 = arith.constant 0 : i32
    %c0_i32_0 = arith.constant 0 : i32
    %c0_i32_1 = arith.constant 0 : i32
    return %arg0, %c0_i32, %c0_i32_0 : i32, i32, i32
  }
}

</mosaic_0001>

<bundles_post_ra>
// kernel: tpu_custom_call.1
= control target key start
LH: loop header
LB: loop body
LE: loop exit
PB: predicated region body
PF: predicated region fallthrough
CT: control target
= control target key end

     0   :  { %8 = vsyncpa [#allocation4], 0  ;;  %s880_s0 = inlined_call_operand.hbm [shape: f32[2,4,256], index: 0, kind: input, shape index: {}]   ;;  %s881_s1 = inlined_call_operand.vmem [shape: f32[8,36], index: 1, kind: input, shape index: {}]   ;;  %s882_s2 = inlined_call_operand.vmem [shape: f32[8,1], index: 2, kind: input, shape index: {}]   ;;  %s883_s3 = inlined_call_operand.hbm [shape: f32[2,8,256], index: 3, kind: output, shape index: {}]  }
   0x1   :  { %10 = vsyncpa [#allocation4 + $0x1], 0 }
   0x2   :  { %11 = vsyncpa [#allocation5], 0 }
   0x3   :  { %13 = vsyncpa [#allocation5 + $0x1], 0  ;;  %s698_s12 = smov 0   ;;  %s700_s13 = smov 0  }
   0x4   :  { %s702_s14 = smov 0   ;;  %s704_s15 = smov 0  }
   0x5 LB: > { %s719_s16 = sadd.s32 4294967295, %s666_s15   ;;  %s486_s17 = sadd.s32 4294967294, %s666_s15   ;;  %s666_s15 = sphi %s704_s15, %s898_s15   ;;  %s662_s14 = sphi %s702_s14, %s897_s14   ;;  %s658_s13 = sphi %s700_s13, %s896_s13   ;;  %s654_s12 = sphi %s698_s12, %s895_s12  }
   0x6   : > { %s723_s18 = sadd.s32 1, %s666_s15   ;;  %s26_s19 = sadd.s32 1, %s662_s14 }
   0x7   : > { %s23_s20 = ssub.s32 %s666_s15, %s723_s18  ;;  %p33_p0 = scmp.ne.s32.totalorder %s662_s14, %s658_s13 }
   0x8   : > { %p24_p1 = scmp.eq.s32.totalorder %s23_s20, 0  ;;  %p34_p2 = scmp.eq.s32.totalorder %s666_s15, 0 }
   0x9   : > { %p39_p3 = scmp.ne.s32.totalorder %s658_s13, %s654_s12  ;;  %p40_p4 = scmp.eq.s32.totalorder %s719_s16, 0 }
   0xa   : > { %s735_s21 = scalar_select %p24_p1, %s662_s14, %s26_s19  }
   0xb   : > { %p737_p5 = por %p34_p2, %p33_p0  ;;  %p741_p6 = por %p40_p4, %p39_p3 }
   0xc   : > { %p105_p7 = scmp.eq.s32.totalorder %s719_s16, 1  ;;  %p111_p8 = scmp.eq.s32.totalorder %s486_s17, 1 }
   0xd   : > { %p525_p10 = scmp.lt.s32.totalorder %s666_s15, 2  ;;  %s137_s26 = sand.u32 1, %s662_s14  }
   0xe   : > { %p748_p11 = por %p105_p7, %p33_p0  ;;  %p752_p12 = por %p111_p8, %p39_p3 }
   0xf   : > { %s503_s27 = sshll.u32 %s666_s15, 7  ;;  %s489_s28 = sshll.u32 %s137_s26, 3 }
  0x10   : > { %s887_s24 = scalar_select %p748_p11, 1, 0 }
  0x11   : > { %s888_s25 = scalar_select %p752_p12, 1, 0 }
  0x12   : > { %s761_s4 = scalar_lea.hbm %s880_s0, %s503_s27  ;;  %s141_s5 = scalar_lea.vmem [#allocation3], %s489_s28 }
  0x13   : > { %s149_s6 = sshll.u32 %s141_s5, 4  ;;  %p765_p13 = pnand %p525_p10, %p737_p5  ;;  %s769_s6 = int_to_ptr.vmem [resolvable:$true] %s149_s6 }
  0x14   : > { %s138_s8 = scalar_lea.sflag [#allocation4], %s137_s26  ;;  %s570_s9 = scalar_lea.hbm %s761_s4, 128 }
  0x15   : > { %p571_p2 = scmp.ne.s32.totalorder %s761_s4, %s570_s9  ;;  %p572_p3 = pneg %p765_p13 }
  0x16   : > { %s575_s17 = scalar_lea.hbm %s880_s0, 256  ;;  %p576_p5 = scmp.lt.u32.totalorder %s761_s4, %s880_s0 }
  0x17   : > { %p573_p4 = pnand %p572_p3, %p571_p2  ;;  %p577_p8 = scmp.lt.u32.totalorder %s575_s17, %s570_s9 }
  0x18   : > { %p579_p9 = scmp.lt.u32.totalorder %s570_s9, %s761_s4 }
  0x19   : > { %p574_p7 = pneg %p573_p4  ;;  %p578_p10 = por %p577_p8, %p576_p5 }
  0x1b   : > { %p580_p0 = por %p579_p9, %p578_p10 }
  0x1d   : > { %p581_p1 = pnand %p580_p0, %p574_p7 }
  0x1f   : > { %584 = shalt.err (!%p581_p1)
}
  0x20   : > { %s585_s22 = scalar_lea.vmem %s769_s6, 128  ;;  %s668_s26 = smov [#allocation3]  }
  0x21   : > { %p586_p2 = scmp.ne.s32.totalorder %s769_s6, %s585_s22  ;;  %s590_s27 = sshll.u32 %s668_s26, 4  ;;  %s591_s27 = int_to_ptr.vmem [resolvable:$false] %s590_s27 }
  0x22   : > { %s592_s28 = scalar_lea.vmem %s591_s27, 256  ;;  %p593_p11 = scmp.lt.s32.totalorder %s769_s6, %s591_s27 }
  0x23   : > { %p588_p4 = pnand %p586_p2, %p572_p3  ;;  %p594_p5 = scmp.lt.s32.totalorder %s592_s28, %s585_s22 }
  0x25   : > { %p589_p12 = pneg %p588_p4  ;;  %p595_p8 = por %p594_p5, %p593_p11 }
  0x27   : > { %p596_p9 = pnand %p595_p8, %p589_p12 }
  0x29   : > { %599 = shalt.err (!%p596_p9)
}
  0x2a   : > { %520 = dma.hbm_to_vmem [thread:$0]  (!%p765_p13), %s761_s4, 128, %s769_s6, %s138_s8  }
  0x2b   : > { %p890_p0 = scmp.lt.s32.totalorder %s666_s15, 3  ;;  %p891_p1 = scmp.ge.s32.totalorder %s666_s15, 1 }
  0x2d   : > { %p155_p3 = pnand %p891_p1, %p890_p0 }
  0x2e   : > { %s803_s29 = sand.u32 (!%p155_p3), 1, %s658_s13  }
  0x2f   : > { %158 = sbr.rel (%p155_p3) target bundleno = 543 (0x21f), region = 32  ;;  %s493_s30 = sshll.u32 (!%p155_p3), %s803_s29, 3 }
  0x30   : > { %s161_s5 = scalar_lea.sflag (!%p155_p3), [#allocation4], %s803_s29  ;;  %s164_s9 = scalar_lea.vmem (!%p155_p3), [#allocation3], %s493_s30 }
  0x36   : > { %645 = dma.done.wait (%p741_p6), %s161_s5, 128  }
  0x37   : > { %647 = vsyncadd (%p741_p6), %s161_s5, 4294967168  ;;  %v233_v0 = vld [vmem:[%s164_s9] sm:$0xff]  ;;  %s669_s4 = smov 127   ;;  %s670_s6 = smov 114   ;;  %vm200_vm0 = vcmask 1043456   ;;  %vm214_vm1 = vcmask 932864  }
  0x38   : > { %240 = vrot.lane.b32.xlu1 %v233_v0, %s669_s4  ;;  %212 = vrot.lane.b32.xlu0 %v233_v0, %s670_s6  ;;  %v237_v1 = vcombine.low %v233_v0, %v233_v0  ;;  %v207_v2 = vcombine.high %v233_v0, %v233_v0  ;;  %s671_s23 = smov 126   ;;  %vm196_vm2 = vcmask 1039360   ;;  %s672_s7 = smov 111   ;;  %v675_v23 = vmov 0.0   ;;  %v312_v25 = vld [vmem:[%s882_s2] sm:$0xff] }
  0x39   : > { %s673_s8 = smov 96   ;;  %s674_s10 = smov 94   ;;  %392 = vmatprep.mubr.f32.mxu0 %v675_v23  ;;  %v676_v24 = vmov 0   ;;  %vm231_vm3 = vcmask 916480   ;;  %vm258_vm4 = vcmask 900096   ;;  %vm226_vm5 = vcmask 1031168  }
  0x3a   : > { %567 = vset.pattern.permute.xlu0 %v676_v24  ;;  %vm285_vm6 = vcmask 777216   ;;  %vm253_vm7 = vcmask 908288   ;;  %vm299_vm8 = vcmask 764928   ;;  %vm280_vm9 = vcmask 785408   ;;  %v301_v47 = vld [vmem:[%s881_s1] sm:$0xff]  ;;  %s494_s22 = sshll.u32 %s803_s29, 4 }
  0x3b   : > { %vm294_vm10 = vcmask 769024   ;;  %vm318_vm11 = vcmask 293888   ;;  %s504_s26 = sshll.u32 %s719_s16, 8  ;;  %s186_s27 = scalar_lea.vmem [#allocation6], %s494_s22 }
  0x3c   : > { %238 = vrot.lane.b32.xlu1 %v237_v1, %s669_s4  ;;  %210 = vrot.lane.b32.xlu0 %v237_v1, %s670_s6  ;;  %s416_s28 = sshll.u32 %s186_s27, 4  ;;  %s836_s9 = scalar_lea.hbm %s883_s3, %s504_s26  ;;  %s838_s28 = int_to_ptr.vmem [resolvable:$true] %s416_s28 }
  0x3d   : > { %s600_s16 = scalar_lea.vmem %s838_s28, 256  ;;  %p892_p11 = scmp.ne.s32.totalorder %s887_s24, 0 }
  0x3e   : > { %p601_p6 = scmp.ne.s32.totalorder %s838_s28, %s600_s16  ;;  %s677_s6 = smov [#allocation6]  }
  0x40   : > { %267 = vrot.lane.b32.xlu1 %v233_v0, %s669_s4  ;;  %265 = vrot.lane.b32.xlu0 %v237_v1, %s669_s4  ;;  %p602_p12 = pnand %p601_p6, %p892_p11 }
  0x42   : > { %p603_p13 = pneg %p602_p12 }
  0x44   : > { %194 = vrot.lane.b32.xlu1 %v233_v0, %s669_s4  ;;  %192 = vrot.lane.b32.xlu0 %v237_v1, %s669_s4  ;;  %s402_s4 = scalar_lea.sflag [#allocation5], %s803_s29 }
  0xaa   : > { %v241_v3 = vpop.permute.xlu1 %240  ;;  %v213_v4 = vpop.permute.xlu0 %212 }
  0xab   : > { %v219_v5 = vsel %vm200_vm0, %v207_v2, %v213_v4  ;;  %v246_v6 = vsel %vm200_vm0, %v207_v2, %v241_v3 }
  0xac   : > { %224 = vrot.lane.b32.xlu1 %v219_v5, %s671_s23 }
  0xae   : > { %v239_v7 = vpop.permute.xlu1 %238  ;;  %v211_v8 = vpop.permute.xlu0 %210 }
  0xaf   : > { %v215_v9 = vsel %vm214_vm1, %v211_v8, %v213_v4  ;;  %v242_v11 = vsel %vm196_vm2, %v239_v7, %v241_v3 }
  0xb0   : > { %251 = vrot.lane.b32.xlu1 %v246_v6, %s672_s7  ;;  %v218_v10 = vsel %vm200_vm0, %v233_v0, %v215_v9  ;;  %v245_v16 = vsel %vm200_vm0, %v233_v0, %v242_v11 }
  0xb1   : > { %222 = vrot.lane.b32.xlu0 %v218_v10, %s671_s23  ;;  %s604_s23 = sshll.u32 %s677_s6, 4  ;;  %s605_s23 = int_to_ptr.vmem [resolvable:$false] %s604_s23 }
  0xb2   : > { %v268_v12 = vpop.permute.xlu1 %267  ;;  %v266_v13 = vpop.permute.xlu0 %265  ;;  %p607_p7 = scmp.lt.s32.totalorder %s838_s28, %s605_s23 }
  0xb3   : > { %v273_v14 = vsel %vm200_vm0, %v207_v2, %v268_v12  ;;  %v269_v15 = vsel %vm196_vm2, %v266_v13, %v268_v12 }
  0xb4   : > { %278 = vrot.lane.b32.xlu1 %v273_v14, %s673_s8  ;;  %v272_v17 = vsel %vm200_vm0, %v233_v0, %v269_v15 }
  0xb5   : > { %249 = vrot.lane.b32.xlu0 %v245_v16, %s672_s7  ;;  %s606_s7 = scalar_lea.vmem %s605_s23, 512 }
  0xb6   : > { %v195_v18 = vpop.permute.xlu1 %194  ;;  %v193_v19 = vpop.permute.xlu0 %192  ;;  %p608_p10 = scmp.lt.s32.totalorder %s606_s7, %s600_s16 }
  0xb7   : > { %v202_v20 = vsel %vm200_vm0, %v207_v2, %v195_v18  ;;  %v197_v21 = vsel %vm196_vm2, %v193_v19, %v195_v18 }
  0xb8   : > { %292 = vrot.lane.b32.xlu1 %v207_v2, %s674_s10  ;;  %204 = vst.msk [vmem:[#allocation2 + $0x8] sm:$0xff] %vm196_vm2, %v202_v20  ;;  %v201_v22 = vsel %vm200_vm0, %v233_v0, %v197_v21  ;;  %p609_p2 = por %p608_p10, %p607_p7 }
  0xb9   : > { %276 = vrot.lane.b32.xlu0 %v272_v17, %s673_s8 }
  0xba   : > { %p610_p4 = pnand %p609_p2, %p603_p13 }
  0xbd   : > { %290 = vrot.lane.b32.xlu0 %v233_v0, %s674_s10 }
  0xbf   : > { %v303_v30 = vld [vmem:[#allocation2 + $0x8] sm:$0xff] }
  0xc1   : > { %315 = vperm.xlu0 %567, %v312_v25  }
 0x11e   : > { %v225_v26 = vpop.permute.xlu1 %224 }
 0x11f   : > { %232 = vst.msk [vmem:[#allocation2 + $0x18] sm:$0xff] %vm231_vm3, %v225_v26 }
 0x122   : > { %v252_v27 = vpop.permute.xlu1 %251 }
 0x123   : > { %259 = vst.msk [vmem:[#allocation2 + $0x28] sm:$0xff] %vm258_vm4, %v252_v27  ;;  %v223_v28 = vpop.permute.xlu0 %222 }
 0x124   : > { %v227_v29 = vsel %vm226_vm5, %v223_v28, %v225_v26 }
 0x125   : > { %v507_v36 = vpack.c.bf16 %v227_v29, %v201_v22 }
 0x126   : > { %v279_v31 = vpop.permute.xlu1 %278  ;;  %v305_v32 = vld [vmem:[#allocation2 + $0x18] sm:$0xff] }
 0x127   : > { %286 = vst.msk [vmem:[#allocation2 + $0x38] sm:$0xff] %vm285_vm6, %v279_v31  ;;  %v250_v33 = vpop.permute.xlu0 %249  ;;  %v505_v34 = vpack.c.bf16 %v305_v32, %v303_v30 }
 0x128   : > { %v254_v35 = vsel %vm253_vm7, %v250_v33, %v252_v27 }
 0x129   : > { %506 = vmatprep.subr.bf16.mxu0 %v505_v34 }
 0x12a   : > { %508 = vmatpush1.bf16.msra.mxu0 %v507_v36  ;;  %v293_v37 = vpop.permute.xlu1 %292  ;;  %v307_v40 = vld [vmem:[#allocation2 + $0x28] sm:$0xff] }
 0x12b   : > { %v277_v38 = vpop.permute.xlu0 %276  ;;  %300 = vst.msk [vmem:[#allocation2 + $0x48] sm:$0xf] %vm299_vm8, %v293_v37 }
 0x12c   : > { %v281_v39 = vsel %vm280_vm9, %v277_v38, %v279_v31 }
 0x12d   : > { %v511_v45 = vpack.c.bf16 %v281_v39, %v254_v35 }
 0x12e   : > { %v309_v41 = vld [vmem:[#allocation2 + $0x38] sm:$0xff] }
 0x12f   : > { %v291_v42 = vpop.permute.xlu0 %290  ;;  %v509_v43 = vpack.c.bf16 %v309_v41, %v307_v40 }
 0x130   : > { %v295_v44 = vsel %vm294_vm10, %v291_v42, %v293_v37 }
 0x131   : > { %298 = vst [vmem:[#allocation2 + $0x40] sm:$0xf] %v295_v44  ;;  %510 = vmatprep.subr.bf16.mxu0 %v509_v43 }
 0x132   : > { %512 = vmatpush1.bf16.msra.mxu0 %v511_v45  ;;  %v311_v46 = vld [vmem:[#allocation2 + $0x48] sm:$0xf] }
 0x133   : > { %495 = vmatprep.subr.msk.mxu0 %vm200_vm0, %v311_v46 }
 0x138   : > { %v310_v48 = vld [vmem:[#allocation2 + $0x40] sm:$0xf] }
 0x139   : > { %496 = vmatpush1.msk.msra.mxu0 %vm200_vm0, %v310_v48 }
 0x13a   : > { %497 = vmatmul.mubr.msk.f32.vlgmr.msra.gmra.mrb[0].mxu0 %vm318_vm11, %v301_v47 }
 0x140   : > { %v316_v49 = vpop.permute.xlu0 %315 }
 0x20d   : > { %v394_v50 = vpop.f32.mrb[0].mxu0 }
 0x20e   : > { %v395_v51 = vadd.f32 %v394_v50, %v316_v49  ;;  %v396_v52 = vpop.f32.mrb[1].mxu0 }
 0x20f   : > { %v397_v53 = vadd.f32 %v396_v52, %v316_v49 }
 0x210   : > { %399 = vst [vmem:[%s186_s27] sm:$0xff] %v395_v51 }
 0x211   : > { %400 = vst [vmem:[%s186_s27 + $0x8] sm:$0xff] %v397_v53 }
 0x212   : > { %613 = shalt.err (!%p610_p4)
}
 0x213   : > { %s614_s29 = scalar_lea.hbm %s836_s9, 256  ;;  %s618_s11 = scalar_lea.hbm %s883_s3, 512 }
 0x214   : > { %p615_p5 = scmp.ne.s32.totalorder %s836_s9, %s614_s29  ;;  %p619_p0 = scmp.lt.u32.totalorder %s836_s9, %s883_s3 }
 0x215   : > { %p620_p1 = scmp.lt.u32.totalorder %s618_s11, %s614_s29  ;;  %p622_p6 = scmp.lt.u32.totalorder %s614_s29, %s836_s9 }
 0x216   : > { %p616_p8 = pnand %p615_p5, %p892_p11 }
 0x217   : > { %p621_p3 = por %p620_p1, %p619_p0 }
 0x218   : > { %p617_p9 = pneg %p616_p8 }
 0x219   : > { %p623_p12 = por %p622_p6, %p621_p3 }
 0x21b   : > { %p624_p13 = pnand %p623_p12, %p617_p9 }
 0x21d   : > { %627 = shalt.err (!%p624_p13)
}
 0x21e   : > { %515 = dma.vmem_to_hbm [thread:$0]  (%p892_p11), %s838_s28, 256, %s836_s9, %s402_s4  }
 0x21f PF: > { %s428_s20 = sand.u32 1, %s654_s12   ;;  %p893_p7 = scmp.ne.s32.totalorder %s888_s25, 0 }
 0x220   : > { %p894_p10 = scmp.ge.s32.totalorder %s666_s15, 2  ;;  %s429_s22 = scalar_lea.sflag [#allocation5], %s428_s20 }
 0x222   : > { %p522_p2 = pnand %p894_p10, %p893_p7 }
 0x224   : > { %649 = dma.done.wait (!%p522_p2), %s429_s22, 256  }
 0x225   : > { %651 = vsyncadd (!%p522_p2), %s429_s22, 4294967040  ;;  %p16_p4 = scmp.ge.s32.totalorder %s723_s18, 4   ;;  %s895_s12 = smov %s658_s13 }
 0x226   : > { %s896_s13 = smov %s662_s14  ;;  %s897_s14 = smov %s735_s21 }
 0x227   : > { %s898_s15 = smov %s723_s18  ;;  %18 = sbr.rel (!%p16_p4) target bundleno = 5 (0x5), region = 77 }
 0x22e   :  { %434 = vsyncpa [#allocation4], 1 }
 0x22f   :  { %436 = vsyncpa [#allocation4 + $0x1], 1 }
 0x230   :  { %437 = vsyncpa [#allocation5], 1 }
 0x231   :  { %439 = vsyncpa [#allocation5 + $0x1], 1 }

</bundles_post_ra>
